<compile_context>
chip_gen: v6e
topology: v6e:2x2x1
jax: 0.10.0
libtpu: 0.0.40
codegen_flags: <defaults>
</compile_context>

<pallas_src>
import math
from dataclasses import dataclass, field
from functools import partial
from typing import Any, Dict, Type

import jax
import jax.numpy as jnp
from jax.experimental import pallas as pl
from jax.experimental.pallas import tpu as pltpu


_LANE = 512  # flattened last dim: large multiple of 128 -> lane-dense vregs


def _round_up(x: int, m: int) -> int:
    return ((x + m - 1) // m) * m


# ----------------------------------------------------------------------------
# Pallas kernel: sum((pred - target)^2) / numel   (MSE reduction)
# ----------------------------------------------------------------------------
def _mse_kernel(pred_ref, targ_ref, out_ref, acc_ref, *, inv_numel: float):
    # Grid = (num_splits [parallel], blocks_per_split [arbitrary/reduction]).
    # acc_ref: block-shaped f32 VMEM scratch; persists across the inner axis.
    k = pl.program_id(1)

    @pl.when(k == 0)
    def _init():
        acc_ref[...] = jnp.zeros_like(acc_ref)

    d = pred_ref[...].astype(jnp.float32) - targ_ref[...].astype(jnp.float32)
    # Pure VPU elementwise accumulate; no per-step cross-lane reduction.
    acc_ref[...] += d * d

    @pl.when(k == pl.num_programs(1) - 1)
    def _finalize():
        # Single XLU reduce per split, scaled by 1/numel; broadcast the scalar
        # into this split's lane-dense (8, 128) output block.
        total = jnp.sum(acc_ref[...]) * inv_numel
        out_ref[...] = jnp.broadcast_to(total, out_ref.shape).astype(jnp.float32)


def mse_loss_pallas(pred: jax.Array, target: jax.Array, *,
                    block_rows: int = 1024, num_splits: int = 2) -> jax.Array:
    """Scalar MSE loss computed inside a Pallas TPU kernel."""
    assert pred.shape == target.shape
    numel = int(math.prod(pred.shape))
    dtype_bytes = jnp.dtype(pred.dtype).itemsize

    # ---- flatten to a lane-dense 2D slab (zero-padded; pads contribute 0) ----
    p = pred.reshape(-1)
    t = target.reshape(-1)
    rows = pl.cdiv(numel, _LANE)

    # Only split across cores when there is enough work to be worth it.
    if rows < num_splits * 64:
        num_splits = 1

    rows_per_split = pl.cdiv(rows, num_splits)
    # Sublane multiple of 16 (covers bf16 packed layout as well as f32).
    block_rows = max(16, min(block_rows, _round_up(rows_per_split, 16)))
    block_rows = _round_up(block_rows, 16)
    blocks_per_split = pl.cdiv(rows_per_split, block_rows)
    padded_rows = num_splits * blocks_per_split * block_rows

    pad = padded_rows * _LANE - numel
    if pad:
        p = jnp.pad(p, (0, pad))
        t = jnp.pad(t, (0, pad))
    p = p.reshape(padded_rows, _LANE)
    t = t.reshape(padded_rows, _LANE)

    # ---- VMEM budget: 2 inputs x 2 pipeline buffers x block + accumulator ----
    block_bytes = block_rows * _LANE * dtype_bytes
    acc_bytes = block_rows * _LANE * 4
    needed = 4 * block_bytes + acc_bytes + (2 << 20)
    vmem_limit = int(min(max(needed, 32 << 20), 96 << 20))  # portable to v7x's 64 MiB

    kernel = partial(_mse_kernel, inv_numel=1.0 / float(numel))
    bps = blocks_per_split  # captured as a Python int in the index maps

    out = pl.pallas_call(
        kernel,
        # One lane-dense (8, 128) block of partial results per split.
        out_shape=jax.ShapeDtypeStruct((num_splits * 8, 128), jnp.float32),
        grid_spec=pltpu.PrefetchScalarGridSpec(
            num_scalar_prefetch=0,
            grid=(num_splits, blocks_per_split),
            in_specs=[
                pl.BlockSpec((block_rows, _LANE), lambda i, k: (i * bps + k, 0)),
                pl.BlockSpec((block_rows, _LANE), lambda i, k: (i * bps + k, 0)),
            ],
            # Same output block across the reduction axis -> accumulator block.
            out_specs=pl.BlockSpec((8, 128), lambda i, k: (i, 0)),
            scratch_shapes=[pltpu.VMEM((block_rows, _LANE), jnp.float32)],
        ),
        compiler_params=pltpu.CompilerParams(
            dimension_semantics=("parallel", "arbitrary"),
            vmem_limit_bytes=vmem_limit,
        ),
        cost_estimate=pl.CostEstimate(
            flops=3 * numel,
            transcendentals=0,
            bytes_accessed=2 * numel * dtype_bytes + num_splits * 8 * 128 * 4,
        ),
    )(p, t)

    # Each split's block is a uniform value (its scaled partial sum); combine.
    partials = out.reshape(num_splits, 8, 128)[:, 0, 0]
    return jnp.sum(partials)


# ----------------------------------------------------------------------------
# Module scaffolding mirroring nerfstudio's Loss / LossConfig
# ----------------------------------------------------------------------------
@dataclass
class LossConfig:
    """Configuration for base loss."""
    _target: Type = field(default_factory=lambda: Loss)


class Loss:
    """JAX/Pallas port of nerfstudio `Loss`.

    forward() delegates to compute_loss(), exactly as in the PyTorch module.
    The base-class compute_loss is abstract; `MSELoss` below is the concrete
    instantiation whose hot path runs in the Pallas kernel above.
    """

    def __init__(self, config: LossConfig, **kwargs) -> None:
        self.config = config

    def compute_loss(self, *, model=None, step: int = 0, ray_bundle=None,
                     batch: Dict[str, Any] = None, outputs: Dict[str, Any] = None,
                     **kwargs) -> jax.Array:
        # TODO(synk): base-class compute_loss raises NotImplementedError in the
        # reference; there is no tensor math to translate at this level.
        raise NotImplementedError

    def forward(self, *, model=None, step: int = 0, ray_bundle=None,
                batch: Dict[str, Any] = None, outputs: Dict[str, Any] = None,
                **kwargs) -> jax.Array:
        """Same as ``compute_loss``."""
        return self.compute_loss(model=model, step=step, ray_bundle=ray_bundle,
                                 batch=batch, outputs=outputs, **kwargs)

    __call__ = forward


class MSELoss(Loss):
    """Concrete loss: mean squared error between outputs['rgb'] and batch['image']."""

    def compute_loss(self, *, model=None, step: int = 0, ray_bundle=None,
                     batch: Dict[str, Any] = None, outputs: Dict[str, Any] = None,
                     **kwargs) -> jax.Array:
        pred = outputs["rgb"]
        target = batch["image"]
        return mse_loss_pallas(pred, target)


# ----------------------------------------------------------------------------
# Demo
# ----------------------------------------------------------------------------
if __name__ == "__main__":
    key = jax.random.PRNGKey(0)
    k1, k2 = jax.random.split(key)

    n_rays, channels = 256, 4  # small ray batch, channels-last
    pred = jax.random.uniform(k1, (n_rays, channels), dtype=jnp.float32)
    target = jax.random.uniform(k2, (n_rays, channels), dtype=jnp.float32)

    loss_fn = MSELoss(LossConfig())
    loss = loss_fn(
        model=None,
        step=0,
        ray_bundle=None,
        batch={"image": target},
        outputs={"rgb": pred},
    )
    loss = jax.block_until_ready(loss)

    # Sanity check against plain-JAX reference.
    ref = jnp.mean((pred - target) ** 2)
    assert jnp.allclose(loss, ref, atol=1e-6), (loss, ref)

    print("KERNEL_OK")
</pallas_src>

<mosaic_0001>
module attributes {stable_mosaic.version = 11 : i64} {
  func.func @_mse_kernel(%arg0: i32, %arg1: i32, %arg2: memref<16x512xf32, #tpu.memory_space<vmem>>, %arg3: memref<16x512xf32, #tpu.memory_space<vmem>>, %arg4: memref<8x128xf32, #tpu.memory_space<vmem>>, %arg5: memref<16x512xf32, #tpu.memory_space<vmem>>) attributes {dimension_semantics = [#tpu.dimension_semantics<parallel>, #tpu.dimension_semantics<arbitrary>], iteration_bounds = array<i64: 1, 1>, scalar_prefetch = 0 : i64, scratch_operands = 1 : i64, tpu.core_type = #tpu.core_type<tc>, window_params = [{transform_indices = @transform_0, window_bounds = array<i64: 16, 512>}, {transform_indices = @transform_1, window_bounds = array<i64: 16, 512>}, {transform_indices = @transform_2, window_bounds = array<i64: 8, 128>}]} {
    %c0_i32 = arith.constant 0 : i32
    %0 = arith.cmpi eq, %arg1, %c0_i32 : i32
    %1 = arith.extui %0 : i1 to i32
    %c0_i32_0 = arith.constant 0 : i32
    %2 = arith.cmpi ne, %1, %c0_i32_0 : i32
    scf.if %2 {
      %cst = arith.constant 0.000000e+00 : f32
      %13 = vector.broadcast %cst : f32 to vector<16x512xf32>
      %c0_10 = arith.constant 0 : index
      %c0_11 = arith.constant 0 : index
      %14 = vector.load %arg5[%c0_10, %c0_11] : memref<16x512xf32, #tpu.memory_space<vmem>>, vector<16x512xf32>
      tpu.vector_store %arg5[%c0_10, %c0_11], %13 {strides = array<i32>} : memref<16x512xf32, #tpu.memory_space<vmem>>, vector<16x512xf32>,
    } else {
    }
    %c0 = arith.constant 0 : index
    %c0_1 = arith.constant 0 : index
    %3 = vector.load %arg2[%c0, %c0_1] : memref<16x512xf32, #tpu.memory_space<vmem>>, vector<16x512xf32>
    %c0_2 = arith.constant 0 : index
    %c0_3 = arith.constant 0 : index
    %4 = vector.load %arg3[%c0_2, %c0_3] : memref<16x512xf32, #tpu.memory_space<vmem>>, vector<16x512xf32>
    %5 = arith.subf %3, %4 : vector<16x512xf32>
    %c0_4 = arith.constant 0 : index
    %c0_5 = arith.constant 0 : index
    %6 = vector.load %arg5[%c0_4, %c0_5] : memref<16x512xf32, #tpu.memory_space<vmem>>, vector<16x512xf32>
    %7 = arith.mulf %5, %5 : vector<16x512xf32>
    %8 = arith.addf %6, %7 : vector<16x512xf32>
    %c0_6 = arith.constant 0 : index
    %c0_7 = arith.constant 0 : index
    %9 = vector.load %arg5[%c0_6, %c0_7] : memref<16x512xf32, #tpu.memory_space<vmem>>, vector<16x512xf32>
    tpu.vector_store %arg5[%c0_6, %c0_7], %8 {strides = array<i32>} : memref<16x512xf32, #tpu.memory_space<vmem>>, vector<16x512xf32>,
    %c0_i32_8 = arith.constant 0 : i32
    %10 = arith.cmpi eq, %arg1, %c0_i32_8 : i32
    %11 = arith.extui %10 : i1 to i32
    %c0_i32_9 = arith.constant 0 : i32
    %12 = arith.cmpi ne, %11, %c0_i32_9 : i32
    scf.if %12 {
      %c0_10 = arith.constant 0 : index
      %c0_11 = arith.constant 0 : index
      %13 = vector.load %arg5[%c0_10, %c0_11] : memref<16x512xf32, #tpu.memory_space<vmem>>, vector<16x512xf32>
      %14 = vector.shape_cast %13 : vector<16x512xf32> to vector<1x16x512xf32>
      %cst = arith.constant dense<0.000000e+00> : vector<1xf32>
      %15 = vector.multi_reduction <add>, %14, %cst [1, 2] : vector<1x16x512xf32> to vector<1xf32>
      %16 = vector.shape_cast %15 : vector<1xf32> to vector<1x1x1xf32>
      %17 = vector.extract %16[0, 0, 0] : f32 from vector<1x1x1xf32>
      %cst_12 = arith.constant 9.765625E-4 : f32
      %18 = arith.mulf %17, %cst_12 : f32
      %19 = vector.broadcast %18 : f32 to vector<8x128xf32>
      %c0_13 = arith.constant 0 : index
      %c0_14 = arith.constant 0 : index
      %20 = vector.load %arg4[%c0_13, %c0_14] : memref<8x128xf32, #tpu.memory_space<vmem>>, vector<8x128xf32>
      tpu.vector_store %arg4[%c0_13, %c0_14], %19 {strides = array<i32>} : memref<8x128xf32, #tpu.memory_space<vmem>>, vector<8x128xf32>,
    } else {
    }
    return
  }
  func.func @transform_0(%arg0: i32, %arg1: i32) -> (i32, i32) {
    %c1_i32 = arith.constant 1 : i32
    %0 = arith.muli %arg0, %c1_i32 : i32
    %1 = arith.addi %0, %arg1 : i32
    %c0_i32 = arith.constant 0 : i32
    %c0_i32_0 = arith.constant 0 : i32
    return %1, %c0_i32 : i32, i32
  }
  func.func @transform_1(%arg0: i32, %arg1: i32) -> (i32, i32) {
    %c1_i32 = arith.constant 1 : i32
    %0 = arith.muli %arg0, %c1_i32 : i32
    %1 = arith.addi %0, %arg1 : i32
    %c0_i32 = arith.constant 0 : i32
    %c0_i32_0 = arith.constant 0 : i32
    return %1, %c0_i32 : i32, i32
  }
  func.func @transform_2(%arg0: i32, %arg1: i32) -> (i32, i32) {
    %c0_i32 = arith.constant 0 : i32
    %c0_i32_0 = arith.constant 0 : i32
    return %arg0, %c0_i32 : i32, i32
  }
}

</mosaic_0001>

<bundles_post_ra>
// kernel: tpu_custom_call.1
= control target key start
LH: loop header
LB: loop body
LE: loop exit
PB: predicated region body
PF: predicated region fallthrough
CT: control target
= control target key end

     0   :  { %7 = vsyncpa [#allocation4], 0  ;;  %s270_s0 = inlined_call_operand.hbm [shape: f32[16,512], index: 0, kind: input, shape index: {}]   ;;  %s271_s1 = inlined_call_operand.hbm [shape: f32[16,512], index: 1, kind: input, shape index: {}]   ;;  %s272_s2 = inlined_call_operand.hbm [shape: f32[8,128], index: 2, kind: output, shape index: {}]  }
   0x1   :  { %8 = vsyncpa [#allocation7], 0 }
   0x2   :  { %9 = vsyncpa [#allocation5], 0  ;;  %s241_s9 = smov [#allocation3]  }
   0x3   :  { %s20_s10 = sshll.u32 %s241_s9, 4  ;;  %s21_s10 = int_to_ptr.vmem [resolvable:$true] %s20_s10 }
   0x4   :  { %s183_s11 = scalar_lea.vmem %s21_s10, 1024  ;;  %p188_p1 = scmp.lt.s32.totalorder %s21_s10, %s21_s10 }
   0x5   :  { %p184_p0 = scmp.ne.s32.totalorder %s21_s10, %s183_s11  ;;  %p189_p2 = scmp.lt.s32.totalorder %s183_s11, %s183_s11 }
   0x7   :  { %p190_p3 = por %p189_p2, %p188_p1 }
   0x9   :  { %p191_p4 = pnand %p190_p3, %p184_p0 }
   0xb   :  { %194 = shalt.err (!%p191_p4)
}
   0xc   :  { %s242_s12 = smov 512   ;;  %s243_s13 = smov 32  }
   0xd   :  { %26 = dma.hbm_to_vmem [thread:$0]  %s270_s0, 1024, %s21_s10, [#allocation4], %s242_s12, %s242_s12, %s243_s13  }
   0xe   :  { %s244_s16 = smov [#allocation6]  }
   0xf   :  { %s37_s17 = sshll.u32 %s244_s16, 4  ;;  %s38_s17 = int_to_ptr.vmem [resolvable:$true] %s37_s17 }
  0x10   :  { %s203_s18 = scalar_lea.vmem %s38_s17, 1024  ;;  %p208_p6 = scmp.lt.s32.totalorder %s38_s17, %s38_s17 }
  0x11   :  { %p204_p5 = scmp.ne.s32.totalorder %s38_s17, %s203_s18  ;;  %p209_p7 = scmp.lt.s32.totalorder %s203_s18, %s203_s18 }
  0x13   :  { %p210_p8 = por %p209_p7, %p208_p6 }
  0x15   :  { %p211_p9 = pnand %p210_p8, %p204_p5 }
  0x17   :  { %214 = shalt.err (!%p211_p9)
}
  0x18   :  { %43 = dma.hbm_to_vmem [thread:$0]  %s271_s1, 1024, %s38_s17, [#allocation7], %s242_s12, %s242_s12, %s243_s13  }
  0x19   :  { %235 = dma.done.wait [#allocation4], 1024  }
  0x1a   :  { %236 = vsyncadd [#allocation4], 4294966272 }
  0x1b   :  { %237 = dma.done.wait [#allocation7], 1024  }
  0x1c   :  { %238 = vsyncadd [#allocation7], 4294966272  ;;  %v66_v0 = vld [vmem:[#allocation3] sm:$0xff]  ;;  %v67_v1 = vld [vmem:[#allocation3 + $0x8] sm:$0xff]  ;;  %s245_s0 = smov [#allocation8]  }
  0x1d   :  { %v68_v2 = vld [vmem:[#allocation3 + $0x10] sm:$0xff]  ;;  %v69_v3 = vld [vmem:[#allocation3 + $0x18] sm:$0xff]  ;;  %v70_v4 = vld [vmem:[#allocation3 + $0x20] sm:$0xff]  ;;  %s158_s1 = sshll.u32 %s245_s0, 4  ;;  %s159_s1 = int_to_ptr.vmem [resolvable:$true] %s158_s1 }
  0x1e   :  { %v74_v5 = vld [vmem:[#allocation6] sm:$0xff]  ;;  %v75_v6 = vld [vmem:[#allocation6 + $0x8] sm:$0xff]  ;;  %v76_v7 = vld [vmem:[#allocation6 + $0x10] sm:$0xff]  ;;  %s215_s23 = scalar_lea.vmem %s159_s1, 128  ;;  %p220_p11 = scmp.lt.s32.totalorder %s159_s1, %s159_s1 }
  0x1f   :  { %v77_v8 = vld [vmem:[#allocation6 + $0x18] sm:$0xff]  ;;  %v82_v9 = vsub.f32 %v66_v0, %v74_v5  ;;  %v78_v10 = vld [vmem:[#allocation6 + $0x20] sm:$0xff]  ;;  %v83_v11 = vsub.f32 %v67_v1, %v75_v6  ;;  %v84_v12 = vsub.f32 %v68_v2, %v76_v7  ;;  %v71_v14 = vld [vmem:[#allocation3 + $0x28] sm:$0xff]  ;;  %p216_p10 = scmp.ne.s32.totalorder %s159_s1, %s215_s23  ;;  %p221_p12 = scmp.lt.s32.totalorder %s215_s23, %s215_s23 }
  0x20   :  { %v85_v13 = vsub.f32 %v69_v3, %v77_v8  ;;  %v79_v15 = vld [vmem:[#allocation6 + $0x28] sm:$0xff]  ;;  %v86_v17 = vsub.f32 %v70_v4, %v78_v10  ;;  %v72_v20 = vld [vmem:[#allocation3 + $0x30] sm:$0xff]  ;;  %v73_v25 = vld [vmem:[#allocation3 + $0x38] sm:$0xff] }
  0x21   :  { %v98_v16 = vmul.f32 %v82_v9, %v82_v9  ;;  %v99_v18 = vmul.f32 %v83_v11, %v83_v11  ;;  %v100_v19 = vmul.f32 %v84_v12, %v84_v12  ;;  %v80_v21 = vld [vmem:[#allocation6 + $0x30] sm:$0xff]  ;;  %v87_v22 = vsub.f32 %v71_v14, %v79_v15  ;;  %v81_v26 = vld [vmem:[#allocation6 + $0x38] sm:$0xff]  ;;  %p222_p13 = por %p221_p12, %p220_p11 }
  0x22   :  { %v101_v23 = vmul.f32 %v85_v13, %v85_v13  ;;  %v88_v27 = vsub.f32 %v72_v20, %v80_v21  ;;  %v102_v28 = vmul.f32 %v86_v17, %v86_v17  ;;  %v89_v30 = vsub.f32 %v73_v25, %v81_v26 }
  0x23   :  { %v133_v24 = vadd.f32 %v99_v18, %v98_v16  ;;  %v103_v31 = vmul.f32 %v87_v22, %v87_v22  ;;  %p223_p0 = pnand %p222_p13, %p216_p10 }
  0x24   :  { %v104_v33 = vmul.f32 %v88_v27, %v88_v27  ;;  %v105_v35 = vmul.f32 %v89_v30, %v89_v30 }
  0x25   :  { %v134_v29 = vadd.f32 %v133_v24, %v100_v19 }
  0x27   :  { %v135_v32 = vadd.f32 %v134_v29, %v101_v23 }
  0x29   :  { %v136_v34 = vadd.f32 %v135_v32, %v102_v28 }
  0x2b   :  { %v137_v36 = vadd.f32 %v136_v34, %v103_v31 }
  0x2d   :  { %v138_v37 = vadd.f32 %v137_v36, %v104_v33 }
  0x2f   :  { %v139_v38 = vadd.f32 %v138_v37, %v105_v35 }
  0x31   :  { %140 = vadd.xlane.f32.xlu0 %v139_v38 }
  0xba   :  { %v141_v39 = vpop.xlane.xlu0 %140 }
  0xbb   :  { %v142_v40 = vrot.slane %v141_v39, 4 }
  0xbd   :  { %v143_v41 = vadd.f32 %v142_v40, %v141_v39 }
  0xbf   :  { %v144_v42 = vrot.slane %v143_v41, 2 }
  0xc1   :  { %v145_v43 = vadd.f32 %v144_v42, %v143_v41 }
  0xc3   :  { %v146_v44 = vrot.slane %v145_v43, 1 }
  0xc5   :  { %v147_v45 = vadd.f32 %v146_v44, %v145_v43 }
  0xc7   :  { %168 = vpush %v147_v45 }
  0xf8   :  { %s169_s21 = spop %168 }
  0xf9   :  { %s149_s22 = smul.f32 0.0009765625, %s169_s21 }
  0xfb   :  { %v150_v46 = vstv %s149_s22 }
  0xfc   :  { %151 = vst [vmem:[#allocation8] sm:$0xff] %v150_v46 }
  0xfd   :  { %226 = shalt.err (!%p223_p0)
}
  0xfe   :  { %161 = dma.vmem_to_hbm [thread:$0]  %s159_s1, 128, %s272_s2, [#allocation5]  }
  0xff   :  { %239 = dma.done.wait [#allocation5], 128  }
 0x100   :  { %240 = vsyncadd [#allocation5], 4294967168 }
 0x101   :  { %165 = vsyncpa [#allocation4], 1 }
 0x102   :  { %166 = vsyncpa [#allocation7], 1 }
 0x103   :  { %167 = vsyncpa [#allocation5], 1 }

</bundles_post_ra>
